<compile_context>
chip_gen: v7x
topology: tpu7x:2x2x1
jax: 0.10.0
libtpu: 0.0.40
codegen_flags: <defaults>
</compile_context>

<pallas_src>
import functools
import math

import jax
import jax.numpy as jnp
import numpy as np
from jax.experimental import pallas as pl
from jax.experimental.pallas import tpu as pltpu


# ---------------------------------------------------------------------------
# Pass 1: input moments.  Per batch, accumulate
#     sum_x[c]   = sum_hw x[c, hw]                 -> (Cin, 1)
#     gram[i, j] = sum_hw x[i, hw] * x[j, hw]      -> (Cin, Cin)
# Output blocks are revisited across the HW-tile axis (accumulators).
# ---------------------------------------------------------------------------
def _stats_kernel(x_ref, s_ref, g_ref):
    @pl.when(pl.program_id(1) == 0)
    def _():
        s_ref[...] = jnp.zeros_like(s_ref)
        g_ref[...] = jnp.zeros_like(g_ref)

    x = x_ref[0].astype(jnp.float32)                          # (Cin, THW)
    cin = x.shape[0]
    s_ref[0] = s_ref[0] + jnp.sum(x, axis=1, keepdims=True)   # (Cin, 1)
    # G is symmetric, so row i == column i; build it column by column.  Each column is a
    # sublane-broadcast multiply plus a lane reduction -- no (THW, Cin) transpose needed.
    cols = [jnp.sum(x[i:i + 1, :] * x, axis=1, keepdims=True) for i in range(cin)]
    g_ref[0] = g_ref[0] + jnp.concatenate(cols, axis=1)       # (Cin, Cin)


# ---------------------------------------------------------------------------
# Pass 2: y = (scale*w) @ x + bias, then LeakyReLU.  The GroupNorm scale is folded into
# the per-batch conv weight, so the big (Cout, THW) tile sees exactly one MXU matmul,
# one add (f32 bias into the f32 accumulator) and one max.  Output stores are lane-dense.
# ---------------------------------------------------------------------------
def _apply_kernel(x_ref, w_ref, bias_ref, o_ref, *, slope):
    x = x_ref[0]                                              # (Cin, THW)
    w = w_ref[0]                                              # (Cout, Cin), pre-scaled
    y = jnp.dot(w, x, preferred_element_type=jnp.float32)     # (Cout, THW) f32
    out = y + bias_ref[0]                                     # (Cout, 1) lane-broadcast
    o_ref[0] = jnp.maximum(out, out * slope).astype(o_ref.dtype)


def _vmem_params():
    """Generation-aware (tile budget, scoped vmem limit)."""
    try:
        cap = int(pltpu.get_tpu_info().vmem_capacity_bytes)
    except Exception:
        cap = 64 * 1024 * 1024                  # conservative, v7x-sized fallback
    budget = max(4 * 1024 * 1024, cap // 4)     # 16 MiB on v7x, 32 MiB on v5e/v6e
    limit = max(16 * 1024 * 1024, min(cap // 2, 64 * 1024 * 1024))
    return budget, limit


def _pick_hw_tile(hw, cin, cout, itemsize, budget_bytes):
    """Choose (thw, n_t, hw_pad): a 128-multiple lane tile driven by the VMEM budget.

    The budget counts the pass-2 double-buffered x/out tiles plus the in-kernel f32
    temporaries (the matmul accumulator and the pre-cast activation)."""
    per_lane = 2 * cin * itemsize + 2 * cout * itemsize + 2 * cout * 4
    max_thw = max(128, (budget_bytes // per_lane) // 128 * 128)
    max_thw = min(max_thw, 32768)               # diminishing returns past ~32K lanes
    n_t = max(1, math.ceil(hw / max_thw))
    thw = math.ceil(math.ceil(hw / n_t) / 128) * 128
    return thw, n_t, thw * n_t


def fusion_module_pallas(x_nchw, w, gamma, beta, *, num_groups=16, eps=1e-5,
                         slope=0.1, hw_tile=None):
    """x_nchw: (B, Cin, H, W); w: (Cout, Cin) 1x1-conv weight; gamma/beta: (Cout,)."""
    b, cin, h, wd = x_nchw.shape
    cout = w.shape[0]
    groups = min(num_groups, cout)
    assert cout % groups == 0, "out_ch must be divisible by the group count"
    cg = cout // groups
    hw = h * wd
    in_dtype = x_nchw.dtype
    itemsize = jnp.dtype(in_dtype).itemsize

    budget, vmem_limit = _vmem_params()
    if hw_tile is None:
        thw, n_t, hw_pad = _pick_hw_tile(hw, cin, cout, itemsize, budget)
    else:
        assert hw_tile % 128 == 0, "hw_tile must be a multiple of 128"
        thw = hw_tile
        n_t = max(1, math.ceil(hw / thw))
        hw_pad = thw * n_t

    # NCHW -> (B, Cin, HW): a pure reshape.  Zero-pad HW up to the tile grid; zeros add
    # nothing to sum_x / Gram so the statistics stay exact, and the padded output columns
    # are sliced off at the end.
    x = x_nchw.reshape(b, cin, hw)
    if hw_pad != hw:
        x = jnp.pad(x, ((0, 0), (0, 0), (0, hw_pad - hw)))

    # ---- pass 1: per-batch input moments --------------------------------------------
    s, g = pl.pallas_call(
        _stats_kernel,
        out_shape=(jax.ShapeDtypeStruct((b, cin, 1), jnp.float32),
                   jax.ShapeDtypeStruct((b, cin, cin), jnp.float32)),
        grid_spec=pltpu.PrefetchScalarGridSpec(
            num_scalar_prefetch=0,
            grid=(b, n_t),
            in_specs=[pl.BlockSpec((1, cin, thw), lambda i, t: (i, 0, t))],
            out_specs=[
                pl.BlockSpec((1, cin, 1), lambda i, t: (i, 0, 0)),
                pl.BlockSpec((1, cin, cin), lambda i, t: (i, 0, 0)),
            ],
        ),
        compiler_params=pltpu.CompilerParams(
            dimension_semantics=("parallel", "arbitrary"),
            vmem_limit_bytes=vmem_limit),
    )(x)

    # ---- tiny per-(batch, channel) GroupNorm math (plain JAX, f32) -------------------
    w_f = w.astype(jnp.float32)                                     # (Cout, Cin)
    sum_x = s[..., 0]                                               # (B, Cin)
    s_c = jnp.einsum('bi,oi->bo', sum_x, w_f)                       # sum_hw y_c
    sq_c = jnp.einsum('oi,bij,oj->bo', w_f, g, w_f)                 # sum_hw y_c^2
    n = jnp.float32(hw * cg)                                        # true (unpadded) count
    g_sum = s_c.reshape(b, groups, cg).sum(axis=2)                  # (B, G)
    g_sq = sq_c.reshape(b, groups, cg).sum(axis=2)                  # (B, G)
    mean_g = g_sum / n
    # E[y^2] - E[y]^2 can dip slightly negative from f32 cancellation; clamp.
    var_g = jnp.maximum(g_sq / n - mean_g * mean_g, 0.0)
    inv_g = jax.lax.rsqrt(var_g + jnp.float32(eps))
    mean_c = jnp.repeat(mean_g, cg, axis=1)                         # (B, Cout)
    inv_c = jnp.repeat(inv_g, cg, axis=1)                           # (B, Cout)
    scale = inv_c * gamma.astype(jnp.float32)[None, :]              # (B, Cout)
    bias = beta.astype(jnp.float32)[None, :] - mean_c * scale       # (B, Cout)
    # Fold the GroupNorm scale into a per-batch conv weight; keep the bias in f32 so it
    # adds straight into the f32 MXU accumulator inside the kernel.
    w_scaled = (scale[:, :, None] * w_f[None, :, :]).astype(in_dtype)   # (B, Cout, Cin)
    bias3 = bias[:, :, None]                                             # (B, Cout, 1) f32

    # ---- pass 2: scaled conv + bias + LeakyReLU, lane-dense (HW-last) output ---------
    out = pl.pallas_call(
        functools.partial(_apply_kernel, slope=float(slope)),
        out_shape=jax.ShapeDtypeStruct((b, cout, hw_pad), in_dtype),
        grid_spec=pltpu.PrefetchScalarGridSpec(
            num_scalar_prefetch=0,
            grid=(b, n_t),
            in_specs=[
                pl.BlockSpec((1, cin, thw), lambda i, t: (i, 0, t)),
                pl.BlockSpec((1, cout, cin), lambda i, t: (i, 0, 0)),
                pl.BlockSpec((1, cout, 1), lambda i, t: (i, 0, 0)),
            ],
            out_specs=pl.BlockSpec((1, cout, thw), lambda i, t: (i, 0, t)),
        ),
        compiler_params=pltpu.CompilerParams(
            dimension_semantics=("parallel", "parallel"),
            vmem_limit_bytes=vmem_limit),
    )(x, w_scaled, bias3)

    if hw_pad != hw:
        out = out[:, :, :hw]
    return out.reshape(b, cout, h, wd)


def fusion_module_ref(x_nchw, w, gamma, beta, *, num_groups=16, eps=1e-5, slope=0.1):
    """Pure-JAX reference matching the PyTorch module semantics."""
    b, cin, h, wd = x_nchw.shape
    cout = w.shape[0]
    groups = min(num_groups, cout)
    cg = cout // groups
    y = jnp.einsum('bihw,oi->bohw', x_nchw.astype(jnp.float32), w.astype(jnp.float32))
    yg = y.reshape(b, groups, cg, h, wd)
    mean = yg.mean(axis=(2, 3, 4), keepdims=True)
    var = yg.var(axis=(2, 3, 4), keepdims=True)
    yn = ((yg - mean) / jnp.sqrt(var + eps)).reshape(b, cout, h, wd)
    out = yn * gamma.reshape(1, cout, 1, 1) + beta.reshape(1, cout, 1, 1)
    return jnp.where(out > 0, out, slope * out)


if __name__ == "__main__":
    key = jax.random.PRNGKey(0)
    k_x, k_w, k_g, k_b = jax.random.split(key, 4)

    # Shapes implied by the module: small fusion block, in_ch=4 -> out_ch=32.
    B, Cin, H, W = 2, 4, 16, 16
    Cout = 32                                    # groups = min(16, 32) = 16

    x = jax.random.normal(k_x, (B, Cin, H, W), dtype=jnp.float32)
    w = jax.random.normal(k_w, (Cout, Cin), dtype=jnp.float32) * (1.0 / math.sqrt(Cin))
    gamma = 1.0 + 0.1 * jax.random.normal(k_g, (Cout,), dtype=jnp.float32)
    beta = 0.1 * jax.random.normal(k_b, (Cout,), dtype=jnp.float32)

    # hw_tile=128 -> 2 HW tiles per batch: exercises the revisited stats accumulators.
    out = jax.block_until_ready(
        fusion_module_pallas(x, w, gamma, beta, num_groups=16, hw_tile=128))
    ref = jax.block_until_ready(fusion_module_ref(x, w, gamma, beta, num_groups=16))
    np.testing.assert_allclose(np.asarray(out), np.asarray(ref), rtol=2e-4, atol=2e-4)

    # Non-128-multiple spatial size (15x15 -> HW=225): exercises the zero-pad path.
    x2 = jax.random.normal(k_x, (1, Cin, 15, 15), dtype=jnp.float32)
    out2 = jax.block_until_ready(fusion_module_pallas(x2, w, gamma, beta, num_groups=16))
    ref2 = jax.block_until_ready(fusion_module_ref(x2, w, gamma, beta, num_groups=16))
    np.testing.assert_allclose(np.asarray(out2), np.asarray(ref2), rtol=2e-4, atol=2e-4)

    print("KERNEL_OK")
</pallas_src>

<mosaic_0001>
module attributes {stable_mosaic.version = 11 : i64} {
  func.func @_stats_kernel(%arg0: i32, %arg1: i32, %arg2: memref<1x4x128xf32, #tpu.memory_space<vmem>>, %arg3: memref<1x4x1xf32, #tpu.memory_space<vmem>>, %arg4: memref<1x4x4xf32, #tpu.memory_space<vmem>>) attributes {dimension_semantics = [#tpu.dimension_semantics<parallel>, #tpu.dimension_semantics<arbitrary>], iteration_bounds = array<i64: 2, 2>, scalar_prefetch = 0 : i64, scratch_operands = 0 : i64, tpu.core_type = #tpu.core_type<tc>, window_params = [{transform_indices = @transform_0, window_bounds = array<i64: 1, 4, 128>}, {transform_indices = @transform_1, window_bounds = array<i64: 1, 4, 1>}, {transform_indices = @transform_2, window_bounds = array<i64: 1, 4, 4>}]} {
    %c0_i32 = arith.constant 0 : i32
    %0 = arith.cmpi eq, %arg1, %c0_i32 : i32
    %1 = arith.extui %0 : i1 to i32
    %c0_i32_0 = arith.constant 0 : i32
    %2 = arith.cmpi ne, %1, %c0_i32_0 : i32
    scf.if %2 {
      %cst_19 = arith.constant 0.000000e+00 : f32
      %40 = vector.broadcast %cst_19 : f32 to vector<1x4x1xf32>
      %c0_20 = arith.constant 0 : index
      %c0_21 = arith.constant 0 : index
      %c0_22 = arith.constant 0 : index
      %41 = vector.load %arg3[%c0_20, %c0_21, %c0_22] : memref<1x4x1xf32, #tpu.memory_space<vmem>>, vector<1x4x1xf32>
      tpu.vector_store %arg3[%c0_20, %c0_21, %c0_22], %40 {strides = array<i32>} : memref<1x4x1xf32, #tpu.memory_space<vmem>>, vector<1x4x1xf32>,
      %cst_23 = arith.constant 0.000000e+00 : f32
      %42 = vector.broadcast %cst_23 : f32 to vector<1x4x4xf32>
      %c0_24 = arith.constant 0 : index
      %c0_25 = arith.constant 0 : index
      %c0_26 = arith.constant 0 : index
      %43 = vector.load %arg4[%c0_24, %c0_25, %c0_26] : memref<1x4x4xf32, #tpu.memory_space<vmem>>, vector<1x4x4xf32>
      tpu.vector_store %arg4[%c0_24, %c0_25, %c0_26], %42 {strides = array<i32>} : memref<1x4x4xf32, #tpu.memory_space<vmem>>, vector<1x4x4xf32>,
    } else {
    }
    %c0 = arith.constant 0 : index
    %c0_1 = arith.constant 0 : index
    %c0_2 = arith.constant 0 : index
    %3 = vector.load %arg2[%c0, %c0_1, %c0_2] : memref<1x4x128xf32, #tpu.memory_space<vmem>>, vector<1x4x128xf32>
    %4 = vector.shape_cast %3 : vector<1x4x128xf32> to vector<4x128xf32>
    %c0_3 = arith.constant 0 : index
    %c0_4 = arith.constant 0 : index
    %c0_5 = arith.constant 0 : index
    %5 = vector.load %arg3[%c0_3, %c0_4, %c0_5] : memref<1x4x1xf32, #tpu.memory_space<vmem>>, vector<1x4x1xf32>
    %6 = vector.shape_cast %5 : vector<1x4x1xf32> to vector<4x1xf32>
    %cst = arith.constant dense<0.000000e+00> : vector<4xf32>
    %7 = vector.multi_reduction <add>, %4, %cst [1] : vector<4x128xf32> to vector<4xf32>
    %8 = vector.shape_cast %7 : vector<4xf32> to vector<4x1xf32>
    %9 = arith.addf %6, %8 : vector<4x1xf32>
    %c0_6 = arith.constant 0 : index
    %c0_7 = arith.constant 0 : index
    %c0_8 = arith.constant 0 : index
    %10 = vector.load %arg3[%c0_6, %c0_7, %c0_8] : memref<1x4x1xf32, #tpu.memory_space<vmem>>, vector<1x4x1xf32>
    %11 = vector.shape_cast %10 : vector<1x4x1xf32> to vector<4x1xf32>
    %12 = vector.shape_cast %9 : vector<4x1xf32> to vector<1x4x1xf32>
    tpu.vector_store %arg3[%c0_6, %c0_7, %c0_8], %12 {strides = array<i32>} : memref<1x4x1xf32, #tpu.memory_space<vmem>>, vector<1x4x1xf32>,
    %13 = vector.extract_strided_slice %4 {offsets = [0, 0], sizes = [1, 128], strides = [1, 1]} : vector<4x128xf32> to vector<1x128xf32>
    %14 = vector.broadcast %13 : vector<1x128xf32> to vector<4x128xf32>
    %15 = arith.mulf %14, %4 : vector<4x128xf32>
    %cst_9 = arith.constant dense<0.000000e+00> : vector<4xf32>
    %16 = vector.multi_reduction <add>, %15, %cst_9 [1] : vector<4x128xf32> to vector<4xf32>
    %17 = vector.shape_cast %16 : vector<4xf32> to vector<4x1xf32>
    %18 = vector.extract_strided_slice %4 {offsets = [1, 0], sizes = [1, 128], strides = [1, 1]} : vector<4x128xf32> to vector<1x128xf32>
    %19 = vector.broadcast %18 : vector<1x128xf32> to vector<4x128xf32>
    %20 = arith.mulf %19, %4 : vector<4x128xf32>
    %cst_10 = arith.constant dense<0.000000e+00> : vector<4xf32>
    %21 = vector.multi_reduction <add>, %20, %cst_10 [1] : vector<4x128xf32> to vector<4xf32>
    %22 = vector.shape_cast %21 : vector<4xf32> to vector<4x1xf32>
    %23 = vector.extract_strided_slice %4 {offsets = [2, 0], sizes = [1, 128], strides = [1, 1]} : vector<4x128xf32> to vector<1x128xf32>
    %24 = vector.broadcast %23 : vector<1x128xf32> to vector<4x128xf32>
    %25 = arith.mulf %24, %4 : vector<4x128xf32>
    %cst_11 = arith.constant dense<0.000000e+00> : vector<4xf32>
    %26 = vector.multi_reduction <add>, %25, %cst_11 [1] : vector<4x128xf32> to vector<4xf32>
    %27 = vector.shape_cast %26 : vector<4xf32> to vector<4x1xf32>
    %28 = vector.extract_strided_slice %4 {offsets = [3, 0], sizes = [1, 128], strides = [1, 1]} : vector<4x128xf32> to vector<1x128xf32>
    %29 = vector.broadcast %28 : vector<1x128xf32> to vector<4x128xf32>
    %30 = arith.mulf %29, %4 : vector<4x128xf32>
    %cst_12 = arith.constant dense<0.000000e+00> : vector<4xf32>
    %31 = vector.multi_reduction <add>, %30, %cst_12 [1] : vector<4x128xf32> to vector<4xf32>
    %32 = vector.shape_cast %31 : vector<4xf32> to vector<4x1xf32>
    %c0_13 = arith.constant 0 : index
    %c0_14 = arith.constant 0 : index
    %c0_15 = arith.constant 0 : index
    %33 = vector.load %arg4[%c0_13, %c0_14, %c0_15] : memref<1x4x4xf32, #tpu.memory_space<vmem>>, vector<1x4x4xf32>
    %34 = vector.shape_cast %33 : vector<1x4x4xf32> to vector<4x4xf32>
    %35 = tpu.concatenate %17, %22, %27, %32 in 1 : vector<4x1xf32>, vector<4x1xf32>, vector<4x1xf32>, vector<4x1xf32> -> vector<4x4xf32>
    %36 = arith.addf %34, %35 : vector<4x4xf32>
    %c0_16 = arith.constant 0 : index
    %c0_17 = arith.constant 0 : index
    %c0_18 = arith.constant 0 : index
    %37 = vector.load %arg4[%c0_16, %c0_17, %c0_18] : memref<1x4x4xf32, #tpu.memory_space<vmem>>, vector<1x4x4xf32>
    %38 = vector.shape_cast %37 : vector<1x4x4xf32> to vector<4x4xf32>
    %39 = vector.shape_cast %36 : vector<4x4xf32> to vector<1x4x4xf32>
    tpu.vector_store %arg4[%c0_16, %c0_17, %c0_18], %39 {strides = array<i32>} : memref<1x4x4xf32, #tpu.memory_space<vmem>>, vector<1x4x4xf32>,
    return
  }
  func.func @transform_0(%arg0: i32, %arg1: i32) -> (i32, i32, i32) {
    %c0_i32 = arith.constant 0 : i32
    %c0_i32_0 = arith.constant 0 : i32
    return %arg0, %c0_i32, %arg1 : i32, i32, i32
  }
  func.func @transform_1(%arg0: i32, %arg1: i32) -> (i32, i32, i32) {
    %c0_i32 = arith.constant 0 : i32
    %c0_i32_0 = arith.constant 0 : i32
    %c0_i32_1 = arith.constant 0 : i32
    return %arg0, %c0_i32, %c0_i32_0 : i32, i32, i32
  }
  func.func @transform_2(%arg0: i32, %arg1: i32) -> (i32, i32, i32) {
    %c0_i32 = arith.constant 0 : i32
    %c0_i32_0 = arith.constant 0 : i32
    %c0_i32_1 = arith.constant 0 : i32
    return %arg0, %c0_i32, %c0_i32_0 : i32, i32, i32
  }
}

</mosaic_0001>

<bundles_post_ra>
// kernel: tpu_custom_call.1
= control target key start
LH: loop header
LB: loop body
LE: loop exit
PB: predicated region body
PF: predicated region fallthrough
CT: control target
= control target key end

     0   :  { %8 = vsyncpa [#allocation3], 0  ;;  %s903_s0 = inlined_call_operand.hbm [shape: f32[2,4,256], index: 0, kind: input, shape index: {}]   ;;  %s904_s1 = inlined_call_operand.vmem [shape: f32[2,4,1], index: 1, kind: output, shape index: {0}]   ;;  %s905_s2 = inlined_call_operand.hbm [shape: f32[2,4,4], index: 2, kind: output, shape index: {1}]  }
   0x1   :  { %10 = vsyncpa [#allocation3 + $0x1], 0 }
   0x2   :  { %11 = vsyncpa [#allocation4], 0 }
   0x3   :  { %13 = vsyncpa [#allocation4 + $0x1], 0  ;;  %s664_s9 = smov 0   ;;  %s666_s10 = smov 0  }
   0x4   :  { %s668_s11 = smov 0   ;;  %s670_s12 = smov 0  }
   0x5   :  { %s672_s13 = smov 0   ;;  %s674_s14 = smov 0  }
   0x6   :  { %s676_s15 = smov 0   ;;  %s678_s16 = smov 0  }
   0x7   :  { %s680_s17 = smov 0   ;;  %s682_s18 = smov 0  }
   0x8   :  { %s684_s19 = smov 0  }
   0x9 LB: > { %s373_s20 = sadd.s32 4294967295, %s644_s19   ;;  %s374_s21 = sadd.s32 4294967294, %s644_s19   ;;  %s644_s19 = sphi %s684_s19, %s19_s19   ;;  %s640_s18 = sphi %s682_s18, %s928_s18   ;;  %s636_s17 = sphi %s680_s17, %s927_s17   ;;  %s632_s16 = sphi %s678_s16, %s926_s16   ;;  %s628_s15 = sphi %s676_s15, %s925_s15   ;;  %s624_s14 = sphi %s674_s14, %s924_s14   ;;  %s620_s13 = sphi %s672_s13, %s923_s13   ;;  %s616_s12 = sphi %s670_s12, %s922_s12   ;;  %s612_s11 = sphi %s668_s11, %s921_s11   ;;  %s608_s10 = sphi %s666_s10, %s920_s10   ;;  %s604_s9 = sphi %s664_s9, %s919_s9  }
   0xa   : > { %s28_s22 = sadd.s32 1, %s636_s17  ;;  %s31_s23 = sadd.s32 1, %s640_s18 }
   0xb   : > { %p29_p0 = scmp.ge.s32.totalorder %s28_s22, 2  ;;  %s40_s24 = sadd.s32 1, %s624_s14 }
   0xc   : > { %p47_p1 = scmp.ne.s32.totalorder %s624_s14, %s620_s13  ;;  %p48_p2 = scmp.eq.s32.totalorder %s644_s19, 0 }
   0xd   : > { %s930_s22 = smov (%p29_p0, %s28_s22), 0  ;;  %s932_s23 = smov (!%p29_p0, %s31_s23), %s640_s18 }
   0xe   : > { %s36_s25 = ssub.s32 %s636_s17, %s930_s22  ;;  %p730_p3 = por %p48_p2, %p47_p1 }
   0xf   : > { %p33_p4 = scmp.ge.s32.totalorder %s932_s23, 2  ;;  %p53_p5 = scmp.ne.s32.totalorder %s620_s13, %s616_s12 }
  0x10   : > { %p54_p6 = scmp.eq.s32.totalorder %s373_s20, 0  ;;  %s92_s27 = sadd.s32 1, %s612_s11 }
  0x11   : > { %s934_s23 = smov (%p33_p4, %s932_s23), 0  ;;  %p102_p8 = scmp.ne.s32.totalorder %s612_s11, %s608_s10 }
  0x12   : > { %909 = sst [smem:[#allocation8_spill]] %s934_s23  ;;  %p738_p7 = por %p54_p6, %p53_p5 }
  0x13   : > { %s35_s29 = ssub.s32 %s640_s18, %s934_s23  ;;  %p103_p9 = scmp.eq.s32.totalorder %s373_s20, 3 }
  0x14   : > { %s37_s30 = sor.u32 %s36_s25, %s35_s29  ;;  %p90_p10 = scmp.eq.s32.totalorder %s35_s29, 0 }
  0x15   : > { %p38_p11 = scmp.eq.s32.totalorder %s37_s30, 0  ;;  %p746_p12 = por %p103_p9, %p102_p8 }
  0x16   : > { %s751_s4 = scalar_select %p90_p10, %s612_s11, %s92_s27  }
  0x17   : > { %s911_s3 = scalar_select %p746_p12, 1, 0 }
  0x18   : > { %s754_s5 = scalar_select %p38_p11, %s624_s14, %s40_s24  }
  0x19   : > { %p108_p13 = scmp.ne.s32.totalorder %s608_s10, %s604_s9  ;;  %p109_p0 = scmp.eq.s32.totalorder %s374_s21, 3 }
  0x1a   : > { %p401_p1 = scmp.lt.s32.totalorder %s644_s19, 4  ;;  %s129_s7 = sand.u32 1, %s624_s14  }
  0x1b   : > { %p759_p2 = por %p109_p0, %p108_p13  ;;  %s377_s8 = sshll.u32 %s129_s7, 2 }
  0x1c   : > { %s378_s12 = sshll.u32 %s640_s18, 1  ;;  %s133_s25 = scalar_lea.vmem [#allocation2], %s377_s8 }
  0x1d   : > { %s912_s6 = scalar_select %p759_p2, 1, 0 }
  0x1e   : > { %s138_s20 = sadd.s32 %s636_s17, %s378_s12  ;;  %s142_s29 = sshll.u32 %s133_s25, 4  ;;  %s766_s29 = int_to_ptr.vmem [resolvable:$true] %s142_s29 }
  0x1f   : > { %s379_s30 = sshll.u32 %s138_s20, 6  ;;  %p775_p4 = pnand %p401_p1, %p730_p3 }
  0x20   : > { %s771_s23 = scalar_lea.hbm %s903_s0, %s379_s30  ;;  %s130_s8 = scalar_lea.sflag [#allocation3], %s129_s7 }
  0x21   : > { %s492_s12 = scalar_lea.hbm %s771_s23, 64  ;;  %p494_p9 = pneg %p775_p4 }
  0x22   : > { %p493_p8 = scmp.ne.s32.totalorder %s771_s23, %s492_s12  ;;  %s497_s25 = scalar_lea.hbm %s903_s0, 256 }
  0x23   : > { %p498_p3 = scmp.lt.u32.totalorder %s771_s23, %s903_s0  ;;  %p499_p13 = scmp.lt.u32.totalorder %s497_s25, %s492_s12 }
  0x24   : > { %p495_p10 = pnand %p494_p9, %p493_p8  ;;  %p501_p1 = scmp.lt.u32.totalorder %s492_s12, %s771_s23 }
  0x25   : > { %p500_p0 = por %p499_p13, %p498_p3 }
  0x26   : > { %p496_p11 = pneg %p495_p10 }
  0x27   : > { %p502_p5 = por %p501_p1, %p500_p0 }
  0x29   : > { %p503_p6 = pnand %p502_p5, %p496_p11 }
  0x2b   : > { %506 = shalt.err (!%p503_p6)
}
  0x2c   : > { %s507_s7 = scalar_lea.vmem %s766_s29, 64  ;;  %s646_s24 = smov [#allocation2]  }
  0x2d   : > { %p508_p8 = scmp.ne.s32.totalorder %s766_s29, %s507_s7  ;;  %s512_s26 = sshll.u32 %s646_s24, 4  ;;  %s513_s26 = int_to_ptr.vmem [resolvable:$false] %s512_s26 }
  0x2e   : > { %s514_s20 = scalar_lea.vmem %s513_s26, 128  ;;  %p515_p12 = scmp.lt.s32.totalorder %s766_s29, %s513_s26 }
  0x2f   : > { %p510_p10 = pnand %p508_p8, %p494_p9  ;;  %p516_p3 = scmp.lt.s32.totalorder %s514_s20, %s507_s7 }
  0x31   : > { %p511_p2 = pneg %p510_p10  ;;  %p517_p13 = por %p516_p3, %p515_p12 }
  0x33   : > { %p518_p0 = pnand %p517_p13, %p511_p2 }
  0x35   : > { %521 = shalt.err (!%p518_p0)
}
  0x36   : > { %396 = dma.hbm_to_vmem [thread:$0]  (!%p775_p4), %s771_s23, 64, %s766_s29, %s130_s8  }
  0x37   : > { %p914_p5 = scmp.lt.s32.totalorder %s644_s19, 5  ;;  %p915_p6 = scmp.ge.s32.totalorder %s644_s19, 1 }
  0x39   : > { %p148_p9 = pnand %p915_p6, %p914_p5 }
  0x3a   : > { %s153_s12 = sand.u32 (!%p148_p9), 1, %s620_s13  }
  0x3b   : > { %151 = sbr.rel (%p148_p9) target bundleno = 254 (0xfe), region = 24  ;;  %s381_s25 = sshll.u32 (!%p148_p9), %s153_s12, 2 }
  0x3c   : > { %s154_s30 = scalar_lea.sflag (!%p148_p9), [#allocation3], %s153_s12  ;;  %s157_s27 = scalar_lea.vmem (!%p148_p9), [#allocation2], %s381_s25 }
  0x42   : > { %595 = dma.done.wait (%p738_p7), %s154_s30, 64  }
  0x43   : > { %597 = vsyncadd (%p738_p7), %s154_s30, 4294967232  ;;  %s179_s23 = sand.u32 1, %s608_s10   ;;  %p182_p12 = scmp.lt.s32.totalorder %s632_s16, 1 }
  0x44   : > { %s382_s29 = sshll.u32 %s179_s23, 2  ;;  %p384_p2 = scmp.ne.s32.totalorder %s628_s15, 0 }
  0x45   : > { %s183_s21 = scalar_select %p182_p12, %s632_s16, 1 }
  0x46   : > { %s825_s20 = scalar_lea.vmem [#allocation5], %s382_s29  ;;  %189 = sbr.rel (%p384_p2) target bundleno = 77 (0x4d), region = 32  ;;  %vm190_vm0 = vcmask (!%p384_p2), 3072   ;;  %vm192_vm1 = vcmask (!%p384_p2), 27648   ;;  %v647_v0 = vmov (!%p384_p2), 0.0  }
  0x47   : > { %s383_s8 = sshll.u32 %s183_s21, 2  ;;  %193 = vst.msk [vmem:[%s825_s20] sm:$0xf] (!%p384_p2), %vm192_vm1, %v647_v0 }
  0x48   : > { %s823_s26 = scalar_lea.vmem %s904_s1, %s383_s8 }
  0x49   : > { %191 = vst.msk [vmem:[%s823_s26] sm:$0xf] (!%p384_p2), %vm190_vm0, %v647_v0 }
  0x4d PF: > { %v203_v1 = vlaneseq  ;;  %v194_v3 = vld [vmem:[%s157_s27] sm:$0xf]  ;;  %vm196_vm2 = vcmask 1043456   ;;  %vm236_vm3 = vcmask 7168   ;;  %vm238_vm4 = vcmask 15360   ;;  %s386_s15 = sshll.u32 %s632_s16, 6 }
  0x4e   : > { %v197_v20 = vsel %vm196_vm2, %v194_v3, 0.0  ;;  %vm240_vm5 = vcmask 23552   ;;  %v235_v26 = vld [vmem:[%s825_s20] sm:$0xf]  ;;  %s266_s28 = sshll.u32 %s825_s20, 4  ;;  %vm243_vm6 = vcmask 27648   ;;  %s837_s30 = scalar_lea.hbm %s905_s2, %s386_s15  ;;  %s839_s28 = int_to_ptr.vmem [resolvable:$true] %s266_s28 }
  0x4f   : > { %v204_v2 = vshrl.u32 %v203_v1, 7  ;;  %vm201_vm7 = vcmask 3072   ;;  %s250_s16 = scalar_lea.sflag [#allocation4], %s179_s23  ;;  %s522_s27 = scalar_lea.vmem %s839_s28, 64 }
  0x50   : > { %v195_v28 = vld [vmem:[%s823_s26] sm:$0xf]  ;;  %p523_p7 = scmp.ne.s32.totalorder %s839_s28, %s522_s27  ;;  %p916_p4 = scmp.ne.s32.totalorder %s911_s3, 0 }
  0x51   : > { %v205_v4 = vsub.s32 0, %v204_v2  ;;  %v221_v5 = vsub.s32 2, %v204_v2  ;;  %v213_v6 = vsub.s32 1, %v204_v2  ;;  %v229_v7 = vsub.s32 3, %v204_v2  ;;  %s648_s29 = smov [#allocation5]  }
  0x52   : > { %p524_p11 = pnand %p523_p7, %p916_p4  ;;  %s526_s21 = sshll.u32 %s648_s29, 4  ;;  %s527_s21 = int_to_ptr.vmem [resolvable:$false] %s526_s21 }
  0x53   : > { %v206_v8 = vrot.slane %v194_v3, %v205_v4  ;;  %v222_v9 = vrot.slane %v194_v3, %v221_v5  ;;  %v214_v10 = vrot.slane %v194_v3, %v213_v6  ;;  %v230_v11 = vrot.slane %v194_v3, %v229_v7  ;;  %s528_s8 = scalar_lea.vmem %s527_s21, 128  ;;  %p529_p8 = scmp.lt.s32.totalorder %s839_s28, %s527_s21 }
  0x54   : > { %p525_p1 = pneg %p524_p11  ;;  %p530_p10 = scmp.lt.s32.totalorder %s528_s8, %s522_s27 }
  0x55   : > { %v207_v12 = vmul.f32 %v206_v8, %v194_v3  ;;  %v223_v13 = vmul.f32 %v222_v9, %v194_v3  ;;  %v215_v14 = vmul.f32 %v214_v10, %v194_v3  ;;  %v231_v15 = vmul.f32 %v230_v11, %v194_v3 }
  0x56   : > { %p531_p3 = por %p530_p10, %p529_p8 }
  0x57   : > { %v208_v16 = vsel %vm196_vm2, %v207_v12, 0.0  ;;  %v224_v17 = vsel %vm196_vm2, %v223_v13, 0.0  ;;  %v216_v18 = vsel %vm196_vm2, %v215_v14, 0.0  ;;  %v232_v19 = vsel %vm196_vm2, %v231_v15, 0.0 }
  0x58   : > { %209 = vadd.xlane.f32.xlu0 %v208_v16  ;;  %225 = vadd.xlane.f32.xlu1 %v224_v17  ;;  %p532_p13 = pnand %p531_p3, %p525_p1 }
  0x5c   : > { %217 = vadd.xlane.f32.xlu0 %v216_v18  ;;  %233 = vadd.xlane.f32.xlu1 %v232_v19 }
  0x60   : > { %198 = vadd.xlane.f32.xlu0 %v197_v20 }
  0xe5   : > { %v210_v21 = vpop.xlane.xlu0 %209  ;;  %v226_v22 = vpop.xlane.xlu1 %225 }
  0xe9   : > { %v218_v23 = vpop.xlane.xlu0 %217  ;;  %v234_v24 = vpop.xlane.xlu1 %233 }
  0xea   : > { %v237_v25 = vsel %vm236_vm3, %v210_v21, %v218_v23 }
  0xeb   : > { %v239_v27 = vsel %vm238_vm4, %v237_v25, %v226_v22 }
  0xec   : > { %v241_v29 = vsel %vm240_vm5, %v239_v27, %v234_v24 }
  0xed   : > { %v242_v30 = vadd.f32 %v241_v29, %v235_v26  ;;  %v199_v31 = vpop.xlane.xlu0 %198 }
  0xee   : > { %v200_v32 = vadd.f32 %v199_v31, %v195_v28 }
  0xef   : > { %244 = vst.msk [vmem:[%s825_s20] sm:$0xf] %vm243_vm6, %v242_v30 }
  0xf0   : > { %202 = vst.msk [vmem:[%s823_s26] sm:$0xf] %vm201_vm7, %v200_v32 }
  0xf1   : > { %535 = shalt.err (!%p532_p13)
}
  0xf2   : > { %s536_s23 = scalar_lea.hbm %s837_s30, 64  ;;  %s540_s26 = scalar_lea.hbm %s905_s2, 128 }
  0xf3   : > { %p537_p0 = scmp.ne.s32.totalorder %s837_s30, %s536_s23  ;;  %p541_p9 = scmp.lt.u32.totalorder %s837_s30, %s905_s2 }
  0xf4   : > { %p542_p12 = scmp.lt.u32.totalorder %s540_s26, %s536_s23  ;;  %p544_p7 = scmp.lt.u32.totalorder %s536_s23, %s837_s30 }
  0xf5   : > { %p538_p5 = pnand %p537_p0, %p916_p4 }
  0xf6   : > { %p543_p2 = por %p542_p12, %p541_p9 }
  0xf7   : > { %p539_p6 = pneg %p538_p5 }
  0xf8   : > { %p545_p11 = por %p544_p7, %p543_p2 }
  0xfa   : > { %p546_p1 = pnand %p545_p11, %p539_p6 }
  0xfc   : > { %549 = shalt.err (!%p546_p1)
}
  0xfd   : > { %391 = dma.vmem_to_hbm [thread:$0]  (%p916_p4), %s839_s28, 64, %s837_s30, %s250_s16  }
  0xfe PF: > { %p402_p8 = scmp.ge.s32.totalorder %s644_s19, 2  ;;  %s285_s12 = sand.u32 1, %s604_s9  }
  0xff   : > { %p917_p10 = scmp.ne.s32.totalorder %s912_s6, 0  ;;  %s286_s25 = scalar_lea.sflag [#allocation4], %s285_s12 }
 0x101   : > { %p398_p3 = pnand %p402_p8, %p917_p10 }
 0x103   : > { %599 = dma.done.wait (!%p398_p3), %s286_s25, 64  }
 0x104   : > { %601 = vsyncadd (!%p398_p3), %s286_s25, 4294967232  ;;  %s19_s19 = sadd.s32 1, %s644_s19   ;;  %s918_s3 = sld [smem:[#allocation8_spill]] }
 0x105   : > { %p16_p13 = scmp.ge.s32.totalorder %s19_s19, 6   ;;  %s919_s9 = smov %s608_s10 }
 0x106   : > { %s920_s10 = smov %s612_s11  ;;  %s921_s11 = smov %s751_s4 }
 0x107   : > { %s922_s12 = smov %s620_s13  ;;  %s923_s13 = smov %s624_s14 }
 0x108   : > { %s924_s14 = smov %s754_s5  ;;  %s925_s15 = smov %s636_s17 }
 0x109   : > { %s926_s16 = smov %s640_s18  ;;  %s927_s17 = smov %s930_s22 }
 0x10a   : > { %s928_s18 = smov %s918_s3  ;;  %18 = sbr.rel (!%p16_p13) target bundleno = 9 (0x9), region = 85 }
 0x111   :  { %291 = vsyncpa [#allocation3], 1 }
 0x112   :  { %293 = vsyncpa [#allocation3 + $0x1], 1 }
 0x113   :  { %294 = vsyncpa [#allocation4], 1 }
 0x114   :  { %296 = vsyncpa [#allocation4 + $0x1], 1 }

</bundles_post_ra>
